<compile_context>
chip_gen: v5e
topology: v5e:2x2
jax: 0.10.0
libtpu: 0.0.40
codegen_flags: <defaults>
</compile_context>

<pallas_src>
import functools

import jax
import jax.numpy as jnp
from jax.experimental import pallas as pl


# -----------------------------------------------------------------------------
# Fused kernel: conv_first (3x3 conv + folded BN) -> global avg pool -> fc
# -----------------------------------------------------------------------------
def _fused_conv_pool_fc_kernel(patches_ref, wconv_ref, bias_ref, wfc_ref,
                               bfc_ref, o_ref):
    # patches_ref: (KCp, N*HW) bf16   im2col, batch folded into the lane axis
    # wconv_ref  : (Cout, KCp) bf16   conv weight^T, BN scale folded, KC-padded
    # bias_ref   : (Cout, 1)   f32    folded BN bias
    # wfc_ref    : (Cout, Kp)  f32    fc weight, lane-padded to Kp=128
    # bfc_ref    : (1, Kp)     f32    fc bias,   lane-padded to Kp=128
    # o_ref      : (N, Kp)     f32    logits (lane-dense store)
    n = o_ref.shape[0]
    hw = patches_ref.shape[1] // n

    # conv_first (3x3 conv, BN scale folded) for the WHOLE batch as one MXU
    # matmul: (Cout, KCp) @ (KCp, N*HW) -> (Cout, N*HW), f32 accumulation.
    conv_t = jnp.dot(wconv_ref[...], patches_ref[...],
                     preferred_element_type=jnp.float32)

    # TODO(synk): DARTS cells (cell_cls) are identity here -> conv_t flows
    # straight into the pooling head.

    # conv_last = AdaptiveAvgPool2d(1): per-batch-element lane-segment reduce.
    # Static, HW(=256)-aligned lane slices: no in-kernel reshape/relayout.
    pooled = jnp.concatenate(
        [jnp.sum(conv_t[:, i * hw:(i + 1) * hw], axis=1, keepdims=True)
         for i in range(n)], axis=1) * (1.0 / hw)                   # (Cout, N)
    # The folded BN bias commutes with the (linear) average pool.
    pooled = pooled + bias_ref[...]

    # fc: logits[n, k] = sum_c pooled[c, n] * wfc[c, k] + b[k], computed as a
    # broadcast multiply + leading-axis reduce (no vreg transpose; tiny, f32).
    wfc = wfc_ref[...]
    logits = (jnp.sum(pooled[:, :, None] * wfc[:, None, :], axis=0)
              + bfc_ref[...])                                       # (N, Kp)
    o_ref[...] = logits.astype(o_ref.dtype)


# -----------------------------------------------------------------------------
# One-time weight folding / padding / casting (hoisted out of the call path)
# -----------------------------------------------------------------------------
def prepare_folded_params(params, *, k_pad=128):
    conv_w = params["conv_w"]                       # (3, 3, Cin, Cout) HWIO
    cin, cout = conv_w.shape[2], conv_w.shape[3]
    kc = 9 * cin
    kcp = -(-kc // 16) * 16                         # bf16 sublane packing: 36 -> 48
    k = params["fc_w"].shape[1]
    kp = max(k_pad, -(-k // 128) * 128)             # lane-dense fc output

    # Fold the inference BN scale into the conv weight; keep only the bias.
    w2 = conv_w.reshape(kc, cout) * params["bn_scale"][None, :]
    wconv_t = jnp.zeros((cout, kcp), jnp.float32).at[:, :kc].set(w2.T)
    bias = params["bn_bias"].reshape(cout, 1).astype(jnp.float32)

    # fc weight/bias zero-padded on the lane axis (zeros contribute nothing).
    wfc = jnp.zeros((cout, kp), jnp.float32).at[:, :k].set(params["fc_w"])
    bfc = jnp.zeros((1, kp), jnp.float32).at[:, :k].set(params["fc_b"])

    return {"wconv_t": wconv_t.astype(jnp.bfloat16),
            "bias": bias, "wfc": wfc, "bfc": bfc}


# -----------------------------------------------------------------------------
# Forward wrapper (accepts NCHW like the PyTorch module)
# -----------------------------------------------------------------------------
def darts_like_net_forward(x_nchw, folded, *, n_classes, n_layers):
    N, Cin, H, W = x_nchw.shape
    HW = H * W
    KC = 9 * Cin
    _, KCp = folded["wconv_t"].shape
    Kp = folded["wfc"].shape[1]

    # --- transpose-free im2col with the batch folded into the lane axis.
    # Viewing the NCHW input as (Cin, N, H, W) and stacking the 9 taps on a new
    # leading axis puts elements directly in (tap, cin | n, h, w) order, so the
    # (KC, N*HW) layout is a pure reshape: no (0,2,1) transpose, no NHWC
    # conversion, batch fold for free.
    xt = jnp.transpose(x_nchw.astype(jnp.float32), (1, 0, 2, 3))   # (Cin,N,H,W)
    xpad = jnp.pad(xt, ((0, 0), (0, 0), (1, 1), (1, 1)))
    taps = [xpad[:, :, dh:dh + H, dw:dw + W]
            for dh in range(3) for dw in range(3)]                 # 9x(Cin,N,H,W)
    patches = jnp.stack(taps, axis=0).reshape(KC, N * HW)
    patches = jnp.pad(patches, ((0, KCp - KC), (0, 0))).astype(jnp.bfloat16)

    logits_padded = pl.pallas_call(
        _fused_conv_pool_fc_kernel,
        out_shape=jax.ShapeDtypeStruct((N, Kp), jnp.float32),
        # Grid-less: the whole ~70 KiB working set sits in VMEM on every TPU
        # generation (incl. v7x's 64 MiB); no grid-step / cross-TC overhead.
    )(patches, folded["wconv_t"], folded["bias"], folded["wfc"], folded["bfc"])

    # for i, cell in enumerate(self.cells): s0, s1 = s1, cell((s0, s1))
    # TODO(synk): cells are identity (cell_cls undefined upstream), so n_layers
    # does not alter the computation on this inference path.
    del n_layers
    return logits_padded[:, :n_classes]


# -----------------------------------------------------------------------------
# Pure-JAX reference (f32) for a sanity check
# -----------------------------------------------------------------------------
def _reference_forward(x_nchw, params):
    y = jax.lax.conv_general_dilated(
        x_nchw.astype(jnp.float32), params["conv_w"], window_strides=(1, 1),
        padding="SAME", dimension_numbers=("NCHW", "HWIO", "NCHW"))
    y = (y * params["bn_scale"][None, :, None, None]
         + params["bn_bias"][None, :, None, None])
    pooled = jnp.mean(y, axis=(2, 3))                              # (N, Cout)
    return pooled @ params["fc_w"] + params["fc_b"]


# -----------------------------------------------------------------------------
# Deterministic parameter construction
# -----------------------------------------------------------------------------
def make_params(key, chn_in, chn, channel_multiplier, n_classes):
    chn_cur = chn * channel_multiplier          # conv_first output channels
    k0, k1, k2 = jax.random.split(key, 3)

    conv_w = 0.1 * jax.random.normal(k0, (3, 3, chn_in, chn_cur), jnp.float32)

    # Fresh nn.BatchNorm2d: gamma=1, beta=0, running_mean=0, running_var=1, eps=1e-5.
    eps = 1e-5
    gamma = jnp.ones((chn_cur,), jnp.float32)
    beta = jnp.zeros((chn_cur,), jnp.float32)
    running_mean = jnp.zeros((chn_cur,), jnp.float32)
    running_var = jnp.ones((chn_cur,), jnp.float32)
    bn_scale = gamma / jnp.sqrt(running_var + eps)
    bn_bias = beta - running_mean * bn_scale

    # fc: Linear(chn_p, n_classes). With identity cells chn_p == chn_cur.
    fc_w = 0.1 * jax.random.normal(k1, (chn_cur, n_classes), jnp.float32)
    fc_b = 0.01 * jax.random.normal(k2, (n_classes,), jnp.float32)

    return {"conv_w": conv_w, "bn_scale": bn_scale, "bn_bias": bn_bias,
            "fc_w": fc_w, "fc_b": fc_b}


if __name__ == "__main__":
    # Small DARTS-like configuration.
    batch, chn_in, H, W = 2, 4, 16, 16
    chn, channel_multiplier = 8, 3
    n_classes = 10
    n_layers = 8                      # auxiliary=False -> aux_pos = -1 (no aux head)

    key = jax.random.PRNGKey(0)
    kx, kparam = jax.random.split(key)
    x = jax.random.normal(kx, (batch, chn_in, H, W), jnp.float32)  # NCHW input
    params = make_params(kparam, chn_in, chn, channel_multiplier, n_classes)

    # Weight folding / padding / casts hoisted out of the per-call path.
    folded = jax.tree_util.tree_map(jax.block_until_ready,
                                    prepare_folded_params(params))

    fwd = jax.jit(functools.partial(darts_like_net_forward,
                                    n_classes=n_classes, n_layers=n_layers))
    logits = fwd(x, folded)
    jax.block_until_ready(logits)

    assert logits.shape == (batch, n_classes), logits.shape

    ref = _reference_forward(x, params)
    jax.block_until_ready(ref)
    assert bool(jnp.allclose(logits, ref, atol=1e-2, rtol=1e-2)), (
        "mismatch: max abs diff = %g" % float(jnp.max(jnp.abs(logits - ref))))

    print("KERNEL_OK")
</pallas_src>

<mosaic_0001>
module attributes {stable_mosaic.version = 11 : i64} {
  func.func @_fused_conv_pool_fc_kernel(%arg0: memref<48x512xbf16, #tpu.memory_space<vmem>>, %arg1: memref<24x48xbf16, #tpu.memory_space<vmem>>, %arg2: memref<24x1xf32, #tpu.memory_space<vmem>>, %arg3: memref<24x128xf32, #tpu.memory_space<vmem>>, %arg4: memref<1x128xf32, #tpu.memory_space<vmem>>, %arg5: memref<2x128xf32, #tpu.memory_space<vmem>>) attributes {dimension_semantics = [], scalar_prefetch = 0 : i64, scratch_operands = 0 : i64, tpu.core_type = #tpu.core_type<tc>} {
    %c0 = arith.constant 0 : index
    %c0_0 = arith.constant 0 : index
    %0 = vector.load %arg1[%c0, %c0_0] : memref<24x48xbf16, #tpu.memory_space<vmem>>, vector<24x48xbf16>
    %c0_1 = arith.constant 0 : index
    %c0_2 = arith.constant 0 : index
    %1 = vector.load %arg0[%c0_1, %c0_2] : memref<48x512xbf16, #tpu.memory_space<vmem>>, vector<48x512xbf16>
    %cst = arith.constant dense<0.000000e+00> : vector<24x512xf32>
    %2 = tpu.matmul %0, %1, %cst {dimension_numbers = #tpu.dot_dimension_numbers<[1], [0], [0], [1], [0, 0, 1, 1], [], []>} : vector<24x48xbf16>, vector<48x512xbf16>, vector<24x512xf32> -> vector<24x512xf32>
    %3 = vector.extract_strided_slice %2 {offsets = [0, 0], sizes = [24, 256], strides = [1, 1]} : vector<24x512xf32> to vector<24x256xf32>
    %cst_3 = arith.constant dense<0.000000e+00> : vector<24xf32>
    %4 = vector.multi_reduction <add>, %3, %cst_3 [1] : vector<24x256xf32> to vector<24xf32>
    %5 = vector.shape_cast %4 : vector<24xf32> to vector<24x1xf32>
    %6 = vector.extract_strided_slice %2 {offsets = [0, 256], sizes = [24, 256], strides = [1, 1]} : vector<24x512xf32> to vector<24x256xf32>
    %cst_4 = arith.constant dense<0.000000e+00> : vector<24xf32>
    %7 = vector.multi_reduction <add>, %6, %cst_4 [1] : vector<24x256xf32> to vector<24xf32>
    %8 = vector.shape_cast %7 : vector<24xf32> to vector<24x1xf32>
    %9 = tpu.concatenate %5, %8 in 1 : vector<24x1xf32>, vector<24x1xf32> -> vector<24x2xf32>
    %cst_5 = arith.constant 3.906250e-03 : f32
    %10 = vector.broadcast %cst_5 : f32 to vector<24x2xf32>
    %11 = arith.mulf %9, %10 : vector<24x2xf32>
    %c0_6 = arith.constant 0 : index
    %c0_7 = arith.constant 0 : index
    %12 = vector.load %arg2[%c0_6, %c0_7] : memref<24x1xf32, #tpu.memory_space<vmem>>, vector<24x1xf32>
    %13 = vector.broadcast %12 : vector<24x1xf32> to vector<24x2xf32>
    %14 = arith.addf %11, %13 : vector<24x2xf32>
    %c0_8 = arith.constant 0 : index
    %c0_9 = arith.constant 0 : index
    %15 = vector.load %arg3[%c0_8, %c0_9] : memref<24x128xf32, #tpu.memory_space<vmem>>, vector<24x128xf32>
    %16 = vector.shape_cast %14 : vector<24x2xf32> to vector<24x2x1xf32>
    %17 = vector.shape_cast %15 : vector<24x128xf32> to vector<24x1x128xf32>
    %18 = vector.broadcast %16 : vector<24x2x1xf32> to vector<24x2x128xf32>
    %19 = vector.broadcast %17 : vector<24x1x128xf32> to vector<24x2x128xf32>
    %20 = arith.mulf %18, %19 : vector<24x2x128xf32>
    %cst_10 = arith.constant dense<0.000000e+00> : vector<2x128xf32>
    %21 = vector.multi_reduction <add>, %20, %cst_10 [0] : vector<24x2x128xf32> to vector<2x128xf32>
    %c0_11 = arith.constant 0 : index
    %c0_12 = arith.constant 0 : index
    %22 = vector.load %arg4[%c0_11, %c0_12] : memref<1x128xf32, #tpu.memory_space<vmem>>, vector<1x128xf32>
    %23 = vector.broadcast %22 : vector<1x128xf32> to vector<2x128xf32>
    %24 = arith.addf %21, %23 : vector<2x128xf32>
    %c0_13 = arith.constant 0 : index
    %c0_14 = arith.constant 0 : index
    %25 = vector.load %arg5[%c0_13, %c0_14] : memref<2x128xf32, #tpu.memory_space<vmem>>, vector<2x128xf32>
    tpu.vector_store %arg5[%c0_13, %c0_14], %24 {strides = array<i32>} : memref<2x128xf32, #tpu.memory_space<vmem>>, vector<2x128xf32>,
    return
  }
}

</mosaic_0001>

<bundles_post_ra>
// kernel: darts_like_net_forward.1
= control target key start
LH: loop header
LB: loop body
LE: loop exit
PB: predicated region body
PF: predicated region fallthrough
CT: control target
= control target key end

     0   :  { %v675_v37 = vmov 0   ;;  %s844_s0 = inlined_call_operand.vmem [shape: bf16[48,512], index: 0, kind: input, shape index: {}]   ;;  %s845_s1 = inlined_call_operand.vmem [shape: bf16[24,48], index: 1, kind: input, shape index: {}]   ;;  %s846_s2 = inlined_call_operand.vmem [shape: f32[24,1], index: 2, kind: input, shape index: {}]   ;;  %s847_s3 = inlined_call_operand.vmem [shape: f32[24,128], index: 3, kind: input, shape index: {}]   ;;  %s848_s4 = inlined_call_operand.vmem [shape: f32[1,128], index: 4, kind: input, shape index: {}]   ;;  %s849_s5 = inlined_call_operand.hbm [shape: f32[2,128], index: 5, kind: output, shape index: {}]  }
   0x1   :  { %v605_v0 = vld [vmem:[%s844_s0 + $0x40] sm:$0xf]  ;;  %v638_v1 = vld [vmem:[%s844_s0 + $0x4c] sm:$0xf0]  ;;  %v636_v2 = vld [vmem:[%s844_s0 + $0x44] sm:$0xf]  ;;  %642 = vset.pattern.permute.xlu0 %v675_v37 }
   0x2   :  { %v606_v3 = vor.u32 %v638_v1, %v605_v0  ;;  %v607_v4 = vld [vmem:[%s844_s0 + $0x50] sm:$0xf0]  ;;  %v613_v5 = vld [vmem:[%s844_s0 + $0x48] sm:$0xf]  ;;  %v639_v6 = vld [vmem:[%s844_s0 + $0x54] sm:$0xf0] }
   0x3   :  { %v610_v7 = vor.u32 %v636_v2, %v607_v4  ;;  %v614_v8 = vor.u32 %v639_v6, %v613_v5  ;;  %v637_v9 = vld [vmem:[%s844_s0 + $0x4c] sm:$0xf]  ;;  %v615_v10 = vld [vmem:[%s844_s0 + $0x58] sm:$0xf0]  ;;  %v589_v11 = vld [vmem:[%s844_s0 + $0x20] sm:$0xf] }
   0x4   :  { %117 = vmatpush.bf16.msra.mxu0 %v606_v3  ;;  %v618_v12 = vor.u32 %v637_v9, %v615_v10  ;;  %v634_v13 = vld [vmem:[%s844_s0 + $0x2c] sm:$0xf0]  ;;  %v632_v14 = vld [vmem:[%s844_s0 + $0x24] sm:$0xf]  ;;  %v591_v15 = vld [vmem:[%s844_s0 + $0x30] sm:$0xf0] }
   0x5   :  { %135 = vmatpush.bf16.msra.mxu1 %v610_v7  ;;  %153 = vmatpush.bf16.msra.mxu2 %v614_v8  ;;  %v590_v16 = vor.u32 %v634_v13, %v589_v11  ;;  %v594_v17 = vor.u32 %v632_v14, %v591_v15  ;;  %v597_v18 = vld [vmem:[%s844_s0 + $0x28] sm:$0xf]  ;;  %v635_v19 = vld [vmem:[%s844_s0 + $0x34] sm:$0xf0]  ;;  %v633_v20 = vld [vmem:[%s844_s0 + $0x2c] sm:$0xf] }
   0x6   :  { %171 = vmatpush.bf16.msra.mxu3 %v618_v12  ;;  %v598_v21 = vor.u32 %v635_v19, %v597_v18  ;;  %v599_v22 = vld [vmem:[%s844_s0 + $0x38] sm:$0xf0]  ;;  %v573_v23 = vld [vmem:[%s844_s0] sm:$0xf]  ;;  %v630_v24 = vld [vmem:[%s844_s0 + $0xc] sm:$0xf0] }
   0x7   :  { %v602_v25 = vor.u32 %v633_v20, %v599_v22  ;;  %v628_v26 = vld [vmem:[%s844_s0 + $0x4] sm:$0xf]  ;;  %v575_v27 = vld [vmem:[%s844_s0 + $0x10] sm:$0xf0]  ;;  %v581_v28 = vld [vmem:[%s844_s0 + $0x8] sm:$0xf]  ;;  %v574_v29 = vor.u32 %v630_v24, %v573_v23 }
   0x8   :  { %118 = vmatpush.bf16.msra.mxu0 %v590_v16  ;;  %v631_v30 = vld [vmem:[%s844_s0 + $0x14] sm:$0xf0]  ;;  %v629_v31 = vld [vmem:[%s844_s0 + $0xc] sm:$0xf]  ;;  %v583_v32 = vld [vmem:[%s844_s0 + $0x18] sm:$0xf0]  ;;  %v578_v33 = vor.u32 %v628_v26, %v575_v27 }
   0x9   :  { %136 = vmatpush.bf16.msra.mxu1 %v594_v17  ;;  %154 = vmatpush.bf16.msra.mxu2 %v598_v21  ;;  %v582_v34 = vor.u32 %v631_v30, %v581_v28  ;;  %v209_v35 = vld [vmem:[%s846_s2] sm:$0xff]  ;;  %v586_v36 = vor.u32 %v629_v31, %v583_v32  ;;  %v210_v38 = vld [vmem:[%s846_s2 + $0x8] sm:$0xff] }
   0xa   :  { %172 = vmatpush.bf16.msra.mxu3 %v602_v25 }
   0xb   :  { %10 = vsyncpa [#allocation3], 0  ;;  %v627_v39 = vld [vmem:[%s845_s1] sm:$0xff]  ;;  %214 = vperm.xlu0 %642, %v209_v35   ;;  %643 = vset.pattern.permute.xlu1 %v675_v37  ;;  %vm105_vm0 = vcmask 392192   ;;  %v211_v40 = vld [vmem:[%s846_s2 + $0x10] sm:$0xff]  ;;  %v234_v2 = vlaneseq  ;;  %vm202_vm1 = vcmask 7168  }
   0xc   :  { %119 = vmatpush.bf16.msra.mxu0 %v574_v29  ;;  %219 = vperm.xlu1 %643, %v210_v38   ;;  %v24_v41 = vld [vmem:[%s845_s1 + $0x8] sm:$0xf]  ;;  %vm497_vm2 = vcmask 1041408   ;;  %s676_s30 = smov [#allocation2]   ;;  %s558_s9 = sshll.u32 %s849_s5, 4  ;;  %s559_s9 = int_to_ptr.hbm [resolvable:$true] %s558_s9 }
   0xd   :  { %137 = vmatpush.bf16.msra.mxu1 %v578_v33  ;;  %155 = vmatpush.bf16.msra.mxu2 %v582_v34  ;;  %v42_v42 = vunpack.c.l.b16 %v24_v41  ;;  %v235_v3 = vshrl.u32 %v234_v2, 7  ;;  %s556_s6 = sshll.u32 %s676_s30, 4  ;;  %s557_s6 = int_to_ptr.vmem [resolvable:$true] %s556_s6 }
   0xe   :  { %173 = vmatpush.bf16.msra.mxu3 %v586_v36  ;;  %644 = vset.pattern.permute.xlu2 %v675_v37 }
   0xf   :  { %619 = vmatmul.msk.bf16.vlgmr.msra.gmra.mxu0 %vm105_vm0, %v627_v39  ;;  %224 = vperm.xlu2 %644, %v211_v40   ;;  %v44_v43 = vpack.c.b16 %v42_v42, %v42_v42 }
  0x10   :  { %621 = vmatmul.msk.bf16.vlgmr.msra.gmra.mxu1 %vm105_vm0, %v627_v39  ;;  %623 = vmatmul.msk.bf16.vlgmr.msra.gmra.mxu2 %vm105_vm0, %v627_v39 }
  0x11   :  { %625 = vmatmul.msk.bf16.vlgmr.msra.gmra.mxu3 %vm105_vm0, %v627_v39 }
  0x13   :  { %647 = vset.pattern.permute.xlu0 %v235_v3 }
  0x14   :  { %646 = vset.pattern.permute.xlu1 %v235_v3 }
  0x17   :  { %645 = vset.pattern.permute.xlu2 %v235_v3 }
  0x1f   :  { %620 = vmatmul.msk.bf16.gmra.mxu0 %vm105_vm0, %v44_v43 }
  0x20   :  { %624 = vmatmul.msk.bf16.gmra.mxu2 %vm105_vm0, %v44_v43  ;;  %622 = vmatmul.msk.bf16.gmra.mxu1 %vm105_vm0, %v44_v43 }
  0x21   :  { %626 = vmatmul.msk.bf16.gmra.mxu3 %vm105_vm0, %v44_v43 }
  0x69   :  { %v225_v7 = vpop.permute.xlu2 %224 }
  0x7d   :  { %v215_v4 = vpop.permute.xlu0 %214 }
  0x7e   :  { %v220_v5 = vpop.permute.xlu1 %219 }
  0x8c   :  { %v121_v44 = vpop.f32.mrf.mxu0 }
  0x8d   :  { %v139_v45 = vpop.f32.mrf.mxu1 }
  0x8e   :  { %v184_v46 = vadd.f32 %v139_v45, %v121_v44 }
  0x90   :  { %185 = vadd.xlane.f32.xlu0 %v184_v46 }
  0x93   :  { %v157_v47 = vpop.f32.mrf.mxu2 }
  0x94   :  { %v175_v48 = vpop.f32.mrf.mxu3  ;;  %v123_v49 = vpop.f32.mrf.mxu0 }
  0x95   :  { %v193_v50 = vadd.f32 %v175_v48, %v157_v47  ;;  %v141_v51 = vpop.f32.mrf.mxu1  ;;  %v230_v48 = vld [vmem:[%s847_s3] sm:$0xff] }
  0x96   :  { %v187_v52 = vadd.f32 %v141_v51, %v123_v49  ;;  %v404_v49 = vrot.slane %v230_v48, 1  ;;  %v405_v51 = vrot.slane %v230_v48, 2  ;;  %v408_v2 = vrot.slane %v230_v48, 5 }
  0x97   :  { %194 = vadd.xlane.f32.xlu1 %v193_v50  ;;  %v425_v50 = vperm.slane %v230_v48, 0 }
  0x98   :  { %188 = vadd.xlane.f32.xlu0 %v187_v52  ;;  %v426_v52 = vperm.slane %v404_v49, 0 }
  0x9b   :  { %v159_v53 = vpop.f32.mrf.mxu2 }
  0x9c   :  { %v177_v54 = vpop.f32.mrf.mxu3  ;;  %v126_v55 = vpop.f32.mrf.mxu0 }
  0x9d   :  { %v196_v56 = vadd.f32 %v177_v54, %v159_v53  ;;  %v144_v57 = vpop.f32.mrf.mxu1 }
  0x9e   :  { %v190_v58 = vadd.f32 %v144_v57, %v126_v55 }
  0x9f   :  { %197 = vadd.xlane.f32.xlu2 %v196_v56  ;;  %v427_v56 = vperm.slane %v405_v51, 0 }
  0xa0   :  { %191 = vadd.xlane.f32.xlu1 %v190_v58  ;;  %v406_v58 = vrot.slane %v230_v48, 3 }
  0xa3   :  { %v162_v59 = vpop.f32.mrf.mxu2 }
  0xa4   :  { %v180_v60 = vpop.f32.mrf.mxu3  ;;  %v128_v61 = vpop.f32.mrf.mxu0 }
  0xa5   :  { %v199_v62 = vadd.f32 %v180_v60, %v162_v59  ;;  %v146_v63 = vpop.f32.mrf.mxu1  ;;  %v407_v59 = vrot.slane %v230_v48, 4 }
  0xa7   :  { %200 = vadd.xlane.f32.xlu2 %v199_v62  ;;  %v429_v3 = vperm.slane %v407_v59, 0 }
  0xab   :  { %v164_v0 = vpop.f32.mrf.mxu2 }
  0xac   :  { %v182_v1 = vpop.f32.mrf.mxu3  ;;  %v428_v0 = vperm.slane %v406_v58, 0 }
 0x103   :  { %v186_v6 = vpop.xlane.xlu0 %185 }
 0x10a   :  { %v195_v8 = vpop.xlane.xlu1 %194 }
 0x10b   :  { %v203_v9 = vsel %vm202_vm1, %v186_v6, %v195_v8  ;;  %v189_v15 = vpop.xlane.xlu0 %188  ;;  %v409_v8 = vrot.slane %v230_v48, 6 }
 0x10c   :  { %v206_v10 = vmul.f32 0.00390625, %v203_v9 }
 0x10e   :  { %v227_v11 = vadd.f32 %v215_v4, %v206_v10  ;;  %v430_v10 = vperm.slane %v408_v2, 0  ;;  %v232_v2 = vld [vmem:[%s847_s3 + $0x10] sm:$0xff] }
 0x110   :  { %v233_v12 = vperm.slane %v227_v11, 0  ;;  %v261_v13 = vperm.slane %v227_v11, 4  ;;  %v240_v14 = vperm.slane %v227_v11, 1  ;;  %v247_v20 = vperm.slane %v227_v11, 2 }
 0x111   :  { %v254_v22 = vperm.slane %v227_v11, 3  ;;  %v268_v23 = vperm.slane %v227_v11, 5  ;;  %v275_v25 = vperm.slane %v227_v11, 6  ;;  %v282_v30 = vperm.slane %v227_v11, 7 }
 0x112   :  { %v198_v16 = vpop.xlane.xlu2 %197  ;;  %238 = vperm.xlu2 %645, %v233_v12   ;;  %266 = vperm.xlu0 %647, %v261_v13  }
 0x113   :  { %v204_v17 = vsel %vm202_vm1, %v189_v15, %v198_v16  ;;  %245 = vperm.xlu1 %646, %v240_v14   ;;  %v192_v27 = vpop.xlane.xlu1 %191  ;;  %v410_v14 = vrot.slane %v230_v48, 7  ;;  %v431_v15 = vperm.slane %v409_v8, 0  ;;  %v231_v16 = vld [vmem:[%s847_s3 + $0x8] sm:$0xff] }
 0x114   :  { %v207_v18 = vmul.f32 0.00390625, %v204_v17  ;;  %v416_v58 = vrot.slane %v231_v16, 6 }
 0x116   :  { %v228_v19 = vadd.f32 %v220_v5, %v207_v18 }
 0x118   :  { %v296_v21 = vperm.slane %v228_v19, 1  ;;  %v317_v24 = vperm.slane %v228_v19, 4  ;;  %v338_v31 = vperm.slane %v228_v19, 7  ;;  %v289_v32 = vperm.slane %v228_v19, 0 }
 0x119   :  { %v303_v34 = vperm.slane %v228_v19, 2  ;;  %v310_v36 = vperm.slane %v228_v19, 3  ;;  %v324_v37 = vperm.slane %v228_v19, 5  ;;  %v331_v39 = vperm.slane %v228_v19, 6 }
 0x11a   :  { %252 = vperm.xlu2 %645, %v247_v20   ;;  %301 = vperm.xlu0 %647, %v296_v21   ;;  %v201_v26 = vpop.xlane.xlu2 %200 }
 0x11b   :  { %259 = vperm.xlu1 %646, %v254_v22   ;;  %v205_v28 = vsel %vm202_vm1, %v192_v27, %v201_v26  ;;  %v432_v22 = vperm.slane %v410_v14, 0 }
 0x11c   :  { %v208_v29 = vmul.f32 0.00390625, %v205_v28  ;;  %v412_v28 = vrot.slane %v231_v16, 2 }
 0x11e   :  { %v229_v33 = vadd.f32 %v225_v7, %v208_v29 }
 0x120   :  { %v359_v35 = vperm.slane %v229_v33, 2  ;;  %v380_v38 = vperm.slane %v229_v33, 5  ;;  %v345_v40 = vperm.slane %v229_v33, 0  ;;  %v352_v41 = vperm.slane %v229_v33, 1 }
 0x121   :  { %v366_v42 = vperm.slane %v229_v33, 3  ;;  %v373_v43 = vperm.slane %v229_v33, 4  ;;  %v387_v44 = vperm.slane %v229_v33, 6  ;;  %v394_v45 = vperm.slane %v229_v33, 7 }
 0x122   :  { %273 = vperm.xlu2 %645, %v268_v23   ;;  %322 = vperm.xlu0 %647, %v317_v24   ;;  %v411_v23 = vrot.slane %v231_v16, 1 }
 0x123   :  { %280 = vperm.xlu1 %646, %v275_v25  }
 0x12a   :  { %287 = vperm.xlu2 %645, %v282_v30   ;;  %343 = vperm.xlu0 %647, %v338_v31   ;;  %v434_v31 = vperm.slane %v411_v23, 0 }
 0x12b   :  { %294 = vperm.xlu1 %646, %v289_v32   ;;  %v433_v32 = vperm.slane %v231_v16, 0 }
 0x132   :  { %308 = vperm.xlu2 %645, %v303_v34   ;;  %364 = vperm.xlu0 %647, %v359_v35   ;;  %v435_v34 = vperm.slane %v412_v28, 0  ;;  %v414_v35 = vrot.slane %v231_v16, 4 }
 0x133   :  { %315 = vperm.xlu1 %646, %v310_v36  }
 0x134   :  { %v437_v49 = vperm.slane %v414_v35, 0 }
 0x13a   :  { %329 = vperm.xlu2 %645, %v324_v37   ;;  %385 = vperm.xlu0 %647, %v380_v38  }
 0x13b   :  { %336 = vperm.xlu1 %646, %v331_v39  }
 0x142   :  { %350 = vperm.xlu2 %645, %v345_v40  }
 0x143   :  { %357 = vperm.xlu1 %646, %v352_v41   ;;  %v413_v41 = vrot.slane %v231_v16, 3 }
 0x14a   :  { %371 = vperm.xlu2 %645, %v366_v42  }
 0x14b   :  { %378 = vperm.xlu1 %646, %v373_v43  }
 0x152   :  { %392 = vperm.xlu2 %645, %v387_v44   ;;  %v415_v44 = vrot.slane %v231_v16, 5 }
 0x153   :  { %399 = vperm.xlu1 %646, %v394_v45  }
 0x16c   :  { %v239_v46 = vpop.permute.xlu2 %238 }
 0x16d   :  { %v473_v55 = vmul.f32 %v425_v50, %v239_v46  ;;  %v436_v50 = vperm.slane %v413_v41, 0 }
 0x16f   :  { %v498_v62 = vsel %vm497_vm2, %v473_v55, 0.0 }
 0x174   :  { %v253_v47 = vpop.permute.xlu2 %252 }
 0x175   :  { %v475_v63 = vmul.f32 %v427_v56, %v253_v47 }
 0x177   :  { %v501_v6 = vsel %vm497_vm2, %v475_v63, 0.0 }
 0x17c   :  { %v274_v53 = vpop.permute.xlu2 %273 }
 0x17d   :  { %v478_v18 = vmul.f32 %v430_v10, %v274_v53  ;;  %v417_v53 = vrot.slane %v231_v16, 7  ;;  %v420_v16 = vrot.slane %v232_v2, 3 }
 0x17f   :  { %v507_v26 = vsel %vm497_vm2, %v478_v18, 0.0  ;;  %v444_v23 = vperm.slane %v420_v16, 0 }
 0x184   :  { %v267_v61 = vpop.permute.xlu0 %266  ;;  %v288_v4 = vpop.permute.xlu2 %287 }
 0x185   :  { %v246_v54 = vpop.permute.xlu1 %245  ;;  %v477_v11 = vmul.f32 %v429_v3, %v267_v61  ;;  %v480_v30 = vmul.f32 %v432_v22, %v288_v4  ;;  %v439_v3 = vperm.slane %v416_v58, 0 }
 0x186   :  { %v474_v57 = vmul.f32 %v426_v52, %v246_v54  ;;  %v438_v52 = vperm.slane %v415_v44, 0 }
 0x187   :  { %v505_v19 = vsel %vm497_vm2, %v477_v11, 0.0  ;;  %v511_v38 = vsel %vm497_vm2, %v480_v30, 0.0  ;;  %v421_v30 = vrot.slane %v232_v2, 4 }
 0x188   :  { %v499_v60 = vsel %vm497_vm2, %v474_v57, 0.0 }
 0x189   :  { %v500_v1 = vadd.f32 %v499_v60, %v498_v62 }
 0x18b   :  { %v502_v9 = vadd.f32 %v501_v6, %v500_v1  ;;  %v440_v1 = vperm.slane %v417_v53, 0  ;;  %v441_v6 = vperm.slane %v232_v2, 0 }
 0x18c   :  { %v302_v17 = vpop.permute.xlu0 %301  ;;  %v309_v25 = vpop.permute.xlu2 %308 }
 0x18d   :  { %v260_v5 = vpop.permute.xlu1 %259  ;;  %v482_v39 = vmul.f32 %v434_v31, %v302_v17  ;;  %v483_v47 = vmul.f32 %v435_v34, %v309_v25  ;;  %v422_v25 = vrot.slane %v232_v2, 5 }
 0x18e   :  { %v476_v7 = vmul.f32 %v428_v0, %v260_v5 }
 0x18f   :  { %v515_v48 = vsel %vm497_vm2, %v482_v39, 0.0  ;;  %v517_v55 = vsel %vm497_vm2, %v483_v47, 0.0 }
 0x190   :  { %v503_v12 = vsel %vm497_vm2, %v476_v7, 0.0  ;;  %v419_v7 = vrot.slane %v232_v2, 2 }
 0x191   :  { %v504_v13 = vadd.f32 %v503_v12, %v502_v9  ;;  %v418_v12 = vrot.slane %v232_v2, 1 }
 0x193   :  { %v506_v20 = vadd.f32 %v505_v19, %v504_v13 }
 0x194   :  { %v323_v36 = vpop.permute.xlu0 %322  ;;  %v330_v45 = vpop.permute.xlu2 %329 }
 0x195   :  { %v281_v21 = vpop.permute.xlu1 %280  ;;  %v508_v29 = vadd.f32 %v507_v26, %v506_v20  ;;  %v485_v56 = vmul.f32 %v437_v49, %v323_v36  ;;  %v486_v63 = vmul.f32 %v438_v52, %v330_v45  ;;  %v443_v20 = vperm.slane %v419_v7, 0 }
 0x196   :  { %v479_v24 = vmul.f32 %v431_v15, %v281_v21  ;;  %v442_v21 = vperm.slane %v418_v12, 0 }
 0x197   :  { %v521_v0 = vsel %vm497_vm2, %v485_v56, 0.0  ;;  %v523_v9 = vsel %vm497_vm2, %v486_v63, 0.0 }
 0x198   :  { %v509_v27 = vsel %vm497_vm2, %v479_v24, 0.0 }
 0x199   :  { %v510_v33 = vadd.f32 %v509_v27, %v508_v29 }
 0x19b   :  { %v512_v42 = vadd.f32 %v511_v38, %v510_v33  ;;  %v423_v33 = vrot.slane %v232_v2, 6  ;;  %v445_v38 = vperm.slane %v421_v30, 0 }
 0x19c   :  { %v344_v59 = vpop.permute.xlu0 %343  ;;  %v351_v4 = vpop.permute.xlu2 %350 }
 0x19d   :  { %v295_v37 = vpop.permute.xlu1 %294  ;;  %v488_v10 = vmul.f32 %v440_v1, %v344_v59  ;;  %v489_v19 = vmul.f32 %v441_v6, %v351_v4  ;;  %v447_v41 = vperm.slane %v423_v33, 0  ;;  %v648_v59 = vld [vmem:[%s848_s4] ss:$0 sm:$0xff] }
 0x19e   :  { %v481_v40 = vmul.f32 %v433_v32, %v295_v37  ;;  %v446_v37 = vperm.slane %v422_v25, 0 }
 0x19f   :  { %v527_v18 = vsel %vm497_vm2, %v488_v10, 0.0  ;;  %v529_v27 = vsel %vm497_vm2, %v489_v19, 0.0 }
 0x1a0   :  { %v513_v43 = vsel %vm497_vm2, %v481_v40, 0.0 }
 0x1a1   :  { %v514_v46 = vadd.f32 %v513_v43, %v512_v42 }
 0x1a3   :  { %v516_v51 = vadd.f32 %v515_v48, %v514_v46  ;;  %v424_v46 = vrot.slane %v232_v2, 7 }
 0x1a4   :  { %v365_v15 = vpop.permute.xlu0 %364  ;;  %v372_v24 = vpop.permute.xlu2 %371 }
 0x1a5   :  { %v316_v54 = vpop.permute.xlu1 %315  ;;  %v518_v60 = vadd.f32 %v517_v55, %v516_v51  ;;  %v491_v28 = vmul.f32 %v443_v20, %v365_v15  ;;  %v492_v36 = vmul.f32 %v444_v23, %v372_v24  ;;  %v448_v53 = vperm.slane %v424_v46, 0 }
 0x1a6   :  { %v484_v57 = vmul.f32 %v436_v50, %v316_v54 }
 0x1a7   :  { %v533_v35 = vsel %vm497_vm2, %v491_v28, 0.0  ;;  %v535_v43 = vsel %vm497_vm2, %v492_v36, 0.0 }
 0x1a8   :  { %v519_v61 = vsel %vm497_vm2, %v484_v57, 0.0 }
 0x1a9   :  { %v520_v62 = vadd.f32 %v519_v61, %v518_v60 }
 0x1ab   :  { %v522_v5 = vadd.f32 %v521_v0, %v520_v62 }
 0x1ac   :  { %v386_v39 = vpop.permute.xlu0 %385  ;;  %v393_v47 = vpop.permute.xlu2 %392 }
 0x1ad   :  { %v337_v8 = vpop.permute.xlu1 %336  ;;  %v524_v13 = vadd.f32 %v523_v9, %v522_v5  ;;  %v494_v44 = vmul.f32 %v446_v37, %v386_v39  ;;  %v495_v52 = vmul.f32 %v447_v41, %v393_v47 }
 0x1ae   :  { %v487_v11 = vmul.f32 %v439_v3, %v337_v8 }
 0x1af   :  { %v539_v51 = vsel %vm497_vm2, %v494_v44, 0.0  ;;  %v541_v56 = vsel %vm497_vm2, %v495_v52, 0.0 }
 0x1b0   :  { %v525_v14 = vsel %vm497_vm2, %v487_v11, 0.0 }
 0x1b1   :  { %v526_v17 = vadd.f32 %v525_v14, %v524_v13 }
 0x1b3   :  { %v528_v22 = vadd.f32 %v527_v18, %v526_v17 }
 0x1b5   :  { %v358_v26 = vpop.permute.xlu1 %357  ;;  %v530_v31 = vadd.f32 %v529_v27, %v528_v22 }
 0x1b6   :  { %v490_v29 = vmul.f32 %v442_v21, %v358_v26 }
 0x1b8   :  { %v531_v32 = vsel %vm497_vm2, %v490_v29, 0.0 }
 0x1b9   :  { %v532_v34 = vadd.f32 %v531_v32, %v530_v31 }
 0x1bb   :  { %v534_v40 = vadd.f32 %v533_v35, %v532_v34 }
 0x1bd   :  { %v379_v42 = vpop.permute.xlu1 %378  ;;  %v536_v48 = vadd.f32 %v535_v43, %v534_v40 }
 0x1be   :  { %v493_v45 = vmul.f32 %v445_v38, %v379_v42 }
 0x1c0   :  { %v537_v49 = vsel %vm497_vm2, %v493_v45, 0.0 }
 0x1c1   :  { %v538_v50 = vadd.f32 %v537_v49, %v536_v48 }
 0x1c3   :  { %v540_v54 = vadd.f32 %v539_v51, %v538_v50 }
 0x1c5   :  { %v400_v55 = vpop.permute.xlu1 %399  ;;  %v542_v58 = vadd.f32 %v541_v56, %v540_v54 }
 0x1c6   :  { %v496_v57 = vmul.f32 %v448_v53, %v400_v55 }
 0x1c8   :  { %v543_v60 = vsel %vm497_vm2, %v496_v57, 0.0 }
 0x1c9   :  { %v544_v61 = vadd.f32 %v543_v60, %v542_v58 }
 0x1cb   :  { %v549_v62 = vadd.f32 %v648_v59, %v544_v61 }
 0x1cd   :  { %550 = vst [vmem:[#allocation2] sm:$0x3] %v549_v62 }
 0x1ce   :  { %561 = dma.vmem_to_hbm [thread:$0]  %s557_s6, 32, %s559_s9, [#allocation3]  }
 0x1cf   :  { %673 = dma.done.wait [#allocation3], 32  }
 0x1d0   :  { %674 = vsyncadd [#allocation3], 4294967264 }
 0x1d1   :  { %566 = vsyncpa [#allocation3], 1 }

</bundles_post_ra>
